<compile_context>
chip_gen: v5e
topology: v5e:2x2
jax: 0.10.0
libtpu: 0.0.40
codegen_flags: <defaults>
</compile_context>

<pallas_src>
import functools

import jax
import jax.numpy as jnp
from jax.experimental import pallas as pl
from jax.experimental.pallas import tpu as pltpu

_SUBLANE = 8


def _mlp_kernel(x_ref, w1_ref, b1_ref, w2_ref, b2_ref, w3_ref, b3_ref, o_ref):
    # x may be streamed in bf16; weights/biases/activations stay f32.
    x = x_ref[...].astype(jnp.float32)
    # Layer 1: Linear + ReLU (f32 accumulation on the MXU).
    h1 = jnp.dot(x, w1_ref[...], preferred_element_type=jnp.float32)
    h1 = jnp.maximum(h1 + b1_ref[...], 0.0)
    # Layer 2: Linear + ReLU.
    h2 = jnp.dot(h1, w2_ref[...], preferred_element_type=jnp.float32)
    h2 = jnp.maximum(h2 + b2_ref[...], 0.0)
    # Layer 3: Linear (narrow output, masked stores are free here).
    out = jnp.dot(h2, w3_ref[...], preferred_element_type=jnp.float32)
    o_ref[...] = (out + b3_ref[...]).astype(o_ref.dtype)


def _round_up(x, m):
    return ((x + m - 1) // m) * m


@functools.partial(jax.jit,
                   static_argnames=("tile_batch", "compute_dtype", "out_dtype"))
def scalar_predictor_forward(x, params, *, tile_batch=4096,
                             compute_dtype=jnp.float32,
                             out_dtype=jnp.float32):
    """Fused MLP forward. x: [B, input_dims] -> [B, output_dims] (out_dtype)."""
    w1, b1, w2, b2, w3, b3 = params
    batch, input_dims = x.shape
    hidden = w1.shape[1]
    out_dims = w3.shape[1]

    # Batch tiling: tile must be a multiple of 8 (sublane).
    b_pad = _round_up(batch, _SUBLANE)
    tb = _round_up(min(tile_batch, b_pad), _SUBLANE)
    # Aim for >= 4 grid steps when the batch allows: 2 TensorCores (v7x) each
    # get >= 2 pipelined steps so the x/out DMAs are actually hidden.
    min_steps = 4
    if b_pad // tb < min_steps and b_pad >= min_steps * _SUBLANE:
        tb = _round_up(-(-b_pad // min_steps), _SUBLANE)
    b_pad = _round_up(b_pad, tb)
    if b_pad != batch:
        x = jnp.pad(x, ((0, b_pad - batch), (0, 0)))

    # Only x is optionally down-cast (halves streamed bytes); weights and
    # biases stay f32 — they are tiny and VMEM-resident across the grid.
    xk = x.astype(compute_dtype)

    grid = (b_pad // tb,)
    x_item = jnp.dtype(compute_dtype).itemsize
    o_item = jnp.dtype(out_dtype).itemsize
    weight_bytes = (input_dims * hidden + hidden * hidden + hidden * out_dims) * 4
    bias_bytes = (hidden + hidden + out_dims) * 4
    flops = 2 * b_pad * (input_dims * hidden + hidden * hidden + hidden * out_dims)
    bytes_accessed = (b_pad * input_dims * x_item      # x in
                      + b_pad * out_dims * o_item      # out
                      + weight_bytes + bias_bytes)

    out = pl.pallas_call(
        _mlp_kernel,
        out_shape=jax.ShapeDtypeStruct((b_pad, out_dims), out_dtype),
        grid_spec=pltpu.PrefetchScalarGridSpec(
            num_scalar_prefetch=0,
            grid=grid,
            in_specs=[
                # streaming batch tiles of x (last dim = full extent)
                pl.BlockSpec((tb, input_dims), lambda i: (i, 0)),
                # weights/biases: constant index_map -> VMEM-resident
                pl.BlockSpec((input_dims, hidden), lambda i: (0, 0)),
                pl.BlockSpec((1, hidden), lambda i: (0, 0)),
                pl.BlockSpec((hidden, hidden), lambda i: (0, 0)),
                pl.BlockSpec((1, hidden), lambda i: (0, 0)),
                pl.BlockSpec((hidden, out_dims), lambda i: (0, 0)),
                pl.BlockSpec((1, out_dims), lambda i: (0, 0)),
            ],
            # narrow output: last dim equals the full array extent (legal),
            # avoids the 32x-inflated padded writeback.
            out_specs=pl.BlockSpec((tb, out_dims), lambda i: (i, 0)),
        ),
        compiler_params=pltpu.CompilerParams(
            dimension_semantics=("parallel",),
        ),
        cost_estimate=pl.CostEstimate(
            flops=flops, transcendentals=0, bytes_accessed=bytes_accessed),
    )(xk, w1, b1, w2, b2, w3, b3)

    return out[:batch, :]


def init_params(key, input_dims, output_dims, hidden=32):
    """Deterministic synthetic parameters (PyTorch-like uniform fan-in init)."""
    ks = jax.random.split(key, 6)

    def lin(kw, kb, fan_in, fan_out):
        bound = 1.0 / jnp.sqrt(fan_in)
        w = jax.random.uniform(kw, (fan_in, fan_out), jnp.float32, -bound, bound)
        b = jax.random.uniform(kb, (1, fan_out), jnp.float32, -bound, bound)
        return w, b

    w1, b1 = lin(ks[0], ks[1], input_dims, hidden)
    w2, b2 = lin(ks[2], ks[3], hidden, hidden)
    w3, b3 = lin(ks[4], ks[5], hidden, output_dims)
    return (w1, b1, w2, b2, w3, b3)


def _reference(x, params):
    w1, b1, w2, b2, w3, b3 = params
    h = jnp.maximum(x @ w1 + b1, 0.0)
    h = jnp.maximum(h @ w2 + b2, 0.0)
    return h @ w3 + b3


if __name__ == "__main__":
    key = jax.random.PRNGKey(0)
    kx, kp, kx2 = jax.random.split(key, 3)

    batch = 8
    input_dims = 16
    output_dims = 4
    hidden = 32

    x = jax.random.normal(kx, (batch, input_dims), dtype=jnp.float32)
    params = init_params(kp, input_dims, output_dims, hidden)

    # 1) Small-batch f32 path (tight tolerance).
    out = scalar_predictor_forward(x, params)
    out = jax.block_until_ready(out)
    ref = _reference(x, params)
    assert out.shape == (batch, output_dims)
    assert jnp.allclose(out, ref, atol=1e-5, rtol=1e-5)

    # 2) Multi-tile batch (exercises grid splitting, >=4 steps, ragged padding).
    x_big = jax.random.normal(kx2, (1000, input_dims), dtype=jnp.float32)
    out_big = jax.block_until_ready(scalar_predictor_forward(x_big, params))
    ref_big = _reference(x_big, params)
    assert out_big.shape == (1000, output_dims)
    assert jnp.allclose(out_big, ref_big, atol=1e-5, rtol=1e-5)

    # 3) bf16-streamed x (halves streamed input bytes; weights/activations f32).
    out_bf16 = jax.block_until_ready(
        scalar_predictor_forward(x_big, params, compute_dtype=jnp.bfloat16))
    assert jnp.allclose(out_bf16, ref_big, atol=3e-2, rtol=3e-2)

    print("KERNEL_OK")
</pallas_src>

<mosaic_0001>
module attributes {stable_mosaic.version = 11 : i64} {
  func.func @_mlp_kernel(%arg0: i32, %arg1: memref<8x16xf32, #tpu.memory_space<vmem>>, %arg2: memref<16x32xf32, #tpu.memory_space<vmem>>, %arg3: memref<1x32xf32, #tpu.memory_space<vmem>>, %arg4: memref<32x32xf32, #tpu.memory_space<vmem>>, %arg5: memref<1x32xf32, #tpu.memory_space<vmem>>, %arg6: memref<32x4xf32, #tpu.memory_space<vmem>>, %arg7: memref<1x4xf32, #tpu.memory_space<vmem>>, %arg8: memref<8x4xf32, #tpu.memory_space<vmem>>) attributes {dimension_semantics = [#tpu.dimension_semantics<parallel>], iteration_bounds = array<i64: 1>, scalar_prefetch = 0 : i64, scratch_operands = 0 : i64, tpu.core_type = #tpu.core_type<tc>, window_params = [{transform_indices = @transform_0, window_bounds = array<i64: 8, 16>}, {pipeline_mode = #tpu.pipeline_mode<synchronous>, transform_indices = @transform_1, window_bounds = array<i64: 16, 32>}, {pipeline_mode = #tpu.pipeline_mode<synchronous>, transform_indices = @transform_2, window_bounds = array<i64: 1, 32>}, {pipeline_mode = #tpu.pipeline_mode<synchronous>, transform_indices = @transform_3, window_bounds = array<i64: 32, 32>}, {pipeline_mode = #tpu.pipeline_mode<synchronous>, transform_indices = @transform_4, window_bounds = array<i64: 1, 32>}, {pipeline_mode = #tpu.pipeline_mode<synchronous>, transform_indices = @transform_5, window_bounds = array<i64: 32, 4>}, {pipeline_mode = #tpu.pipeline_mode<synchronous>, transform_indices = @transform_6, window_bounds = array<i64: 1, 4>}, {transform_indices = @transform_7, window_bounds = array<i64: 8, 4>}]} {
    %c0 = arith.constant 0 : index
    %c0_0 = arith.constant 0 : index
    %0 = vector.load %arg1[%c0, %c0_0] : memref<8x16xf32, #tpu.memory_space<vmem>>, vector<8x16xf32>
    %c0_1 = arith.constant 0 : index
    %c0_2 = arith.constant 0 : index
    %1 = vector.load %arg2[%c0_1, %c0_2] : memref<16x32xf32, #tpu.memory_space<vmem>>, vector<16x32xf32>
    %cst = arith.constant dense<0.000000e+00> : vector<8x32xf32>
    %2 = tpu.matmul %0, %1, %cst {dimension_numbers = #tpu.dot_dimension_numbers<[1], [0], [0], [1], [0, 0, 1, 1], [], []>} : vector<8x16xf32>, vector<16x32xf32>, vector<8x32xf32> -> vector<8x32xf32>
    %c0_3 = arith.constant 0 : index
    %c0_4 = arith.constant 0 : index
    %3 = vector.load %arg3[%c0_3, %c0_4] : memref<1x32xf32, #tpu.memory_space<vmem>>, vector<1x32xf32>
    %4 = vector.broadcast %3 : vector<1x32xf32> to vector<8x32xf32>
    %5 = arith.addf %2, %4 : vector<8x32xf32>
    %cst_5 = arith.constant 0.000000e+00 : f32
    %6 = vector.broadcast %cst_5 : f32 to vector<8x32xf32>
    %7 = arith.maximumf %5, %6 : vector<8x32xf32>
    %c0_6 = arith.constant 0 : index
    %c0_7 = arith.constant 0 : index
    %8 = vector.load %arg4[%c0_6, %c0_7] : memref<32x32xf32, #tpu.memory_space<vmem>>, vector<32x32xf32>
    %cst_8 = arith.constant dense<0.000000e+00> : vector<8x32xf32>
    %9 = tpu.matmul %7, %8, %cst_8 {dimension_numbers = #tpu.dot_dimension_numbers<[1], [0], [0], [1], [0, 0, 1, 1], [], []>} : vector<8x32xf32>, vector<32x32xf32>, vector<8x32xf32> -> vector<8x32xf32>
    %c0_9 = arith.constant 0 : index
    %c0_10 = arith.constant 0 : index
    %10 = vector.load %arg5[%c0_9, %c0_10] : memref<1x32xf32, #tpu.memory_space<vmem>>, vector<1x32xf32>
    %11 = vector.broadcast %10 : vector<1x32xf32> to vector<8x32xf32>
    %12 = arith.addf %9, %11 : vector<8x32xf32>
    %cst_11 = arith.constant 0.000000e+00 : f32
    %13 = vector.broadcast %cst_11 : f32 to vector<8x32xf32>
    %14 = arith.maximumf %12, %13 : vector<8x32xf32>
    %c0_12 = arith.constant 0 : index
    %c0_13 = arith.constant 0 : index
    %15 = vector.load %arg6[%c0_12, %c0_13] : memref<32x4xf32, #tpu.memory_space<vmem>>, vector<32x4xf32>
    %cst_14 = arith.constant dense<0.000000e+00> : vector<8x4xf32>
    %16 = tpu.matmul %14, %15, %cst_14 {dimension_numbers = #tpu.dot_dimension_numbers<[1], [0], [0], [1], [0, 0, 1, 1], [], []>} : vector<8x32xf32>, vector<32x4xf32>, vector<8x4xf32> -> vector<8x4xf32>
    %c0_15 = arith.constant 0 : index
    %c0_16 = arith.constant 0 : index
    %17 = vector.load %arg7[%c0_15, %c0_16] : memref<1x4xf32, #tpu.memory_space<vmem>>, vector<1x4xf32>
    %18 = vector.broadcast %17 : vector<1x4xf32> to vector<8x4xf32>
    %19 = arith.addf %16, %18 : vector<8x4xf32>
    %c0_17 = arith.constant 0 : index
    %c0_18 = arith.constant 0 : index
    %20 = vector.load %arg8[%c0_17, %c0_18] : memref<8x4xf32, #tpu.memory_space<vmem>>, vector<8x4xf32>
    tpu.vector_store %arg8[%c0_17, %c0_18], %19 {strides = array<i32>} : memref<8x4xf32, #tpu.memory_space<vmem>>, vector<8x4xf32>,
    return
  }
  func.func @transform_0(%arg0: i32) -> (i32, i32) {
    %c0_i32 = arith.constant 0 : i32
    %c0_i32_0 = arith.constant 0 : i32
    return %arg0, %c0_i32 : i32, i32
  }
  func.func @transform_1(%arg0: i32) -> (i32, i32) {
    %c0_i32 = arith.constant 0 : i32
    %c0_i32_0 = arith.constant 0 : i32
    %c0_i32_1 = arith.constant 0 : i32
    return %c0_i32, %c0_i32_0 : i32, i32
  }
  func.func @transform_2(%arg0: i32) -> (i32, i32) {
    %c0_i32 = arith.constant 0 : i32
    %c0_i32_0 = arith.constant 0 : i32
    %c0_i32_1 = arith.constant 0 : i32
    return %c0_i32, %c0_i32_0 : i32, i32
  }
  func.func @transform_3(%arg0: i32) -> (i32, i32) {
    %c0_i32 = arith.constant 0 : i32
    %c0_i32_0 = arith.constant 0 : i32
    %c0_i32_1 = arith.constant 0 : i32
    return %c0_i32, %c0_i32_0 : i32, i32
  }
  func.func @transform_4(%arg0: i32) -> (i32, i32) {
    %c0_i32 = arith.constant 0 : i32
    %c0_i32_0 = arith.constant 0 : i32
    %c0_i32_1 = arith.constant 0 : i32
    return %c0_i32, %c0_i32_0 : i32, i32
  }
  func.func @transform_5(%arg0: i32) -> (i32, i32) {
    %c0_i32 = arith.constant 0 : i32
    %c0_i32_0 = arith.constant 0 : i32
    %c0_i32_1 = arith.constant 0 : i32
    return %c0_i32, %c0_i32_0 : i32, i32
  }
  func.func @transform_6(%arg0: i32) -> (i32, i32) {
    %c0_i32 = arith.constant 0 : i32
    %c0_i32_0 = arith.constant 0 : i32
    %c0_i32_1 = arith.constant 0 : i32
    return %c0_i32, %c0_i32_0 : i32, i32
  }
  func.func @transform_7(%arg0: i32) -> (i32, i32) {
    %c0_i32 = arith.constant 0 : i32
    %c0_i32_0 = arith.constant 0 : i32
    return %arg0, %c0_i32 : i32, i32
  }
}

</mosaic_0001>

<bundles_post_ra>
// kernel: scalar_predictor_forward.1
= control target key start
LH: loop header
LB: loop body
LE: loop exit
PB: predicated region body
PF: predicated region fallthrough
CT: control target
= control target key end

     0   :  { %12 = vsyncpa [#allocation3], 0  ;;  %s308_s0 = inlined_call_operand.hbm [shape: f32[8,16], index: 0, kind: input, shape index: {}]   ;;  %s309_s1 = inlined_call_operand.hbm [shape: f32[16,32], index: 1, kind: input, shape index: {}]   ;;  %s310_s2 = inlined_call_operand.vmem [shape: f32[1,32], index: 2, kind: input, shape index: {}]   ;;  %s311_s3 = inlined_call_operand.vmem [shape: f32[32,32], index: 3, kind: input, shape index: {}]   ;;  %s312_s4 = inlined_call_operand.vmem [shape: f32[1,32], index: 4, kind: input, shape index: {}]   ;;  %s313_s5 = inlined_call_operand.vmem [shape: f32[32,4], index: 5, kind: input, shape index: {}]   ;;  %s314_s6 = inlined_call_operand.vmem [shape: f32[1,4], index: 6, kind: input, shape index: {}]   ;;  %s315_s7 = inlined_call_operand.vmem [shape: f32[8,4], index: 7, kind: output, shape index: {}]  }
   0x1   :  { %s19_s26 = sshll.u32 %s308_s0, 4  ;;  %s20_s26 = int_to_ptr.hbm [resolvable:$true] %s19_s26 }
   0x2   :  { %13 = vsyncpa [#allocation5], 0  ;;  %s222_s27 = smov [#allocation2]   ;;  %s29_s8 = sshll.u32 %s309_s1, 4  ;;  %s30_s8 = int_to_ptr.hbm [resolvable:$true] %s29_s8 }
   0x3   :  { %s21_s28 = sshll.u32 %s222_s27, 4  ;;  %s223_s9 = smov [#allocation4]   ;;  %s22_s28 = int_to_ptr.vmem [resolvable:$true] %s21_s28 }
   0x4   :  { %24 = dma.hbm_to_vmem [thread:$0]  %s20_s26, 128, %s22_s28, [#allocation3]  }
   0x5   :  { %s31_s10 = sshll.u32 %s223_s9, 4  ;;  %s224_s11 = smov 128   ;;  %s32_s10 = int_to_ptr.vmem [resolvable:$true] %s31_s10 }
   0x6   :  { %s225_s12 = smov 8  }
   0x7   :  { %37 = dma.hbm_to_vmem [thread:$0]  %s30_s8, 256, %s32_s10, [#allocation5], %s224_s11, %s224_s11, %s225_s12  }
   0x8   :  { %218 = dma.done.wait [#allocation3], 128  }
   0x9   :  { %219 = vsyncadd [#allocation3], 4294967168 }
   0xa   :  { %220 = dma.done.wait [#allocation5], 256  }
   0xb   :  { %221 = vsyncadd [#allocation5], 4294967040  ;;  %v58_v0 = vld [vmem:[#allocation4 + $0x8] sm:$0xff]  ;;  %v57_v1 = vld [vmem:[#allocation4] sm:$0xff]  ;;  %vm63_vm0 = vcmask 130048   ;;  %vm96_vm1 = vcmask 261120  }
   0xc   :  { %81 = vmatpush.msra.mxu0 %v58_v0  ;;  %v56_v2 = vld [vmem:[#allocation2] sm:$0xff]  ;;  %v91_v3 = vld [vmem:[%s311_s3 + $0x18] sm:$0xff]  ;;  %v90_v4 = vld [vmem:[%s311_s3 + $0x10] sm:$0xff]  ;;  %vm152_vm2 = vcmask 31744  }
   0xd   :  { %112 = vmatpush.msra.mxu1 %v91_v3  ;;  %v89_v5 = vld [vmem:[%s311_s3 + $0x8] sm:$0xff]  ;;  %v88_v6 = vld [vmem:[%s311_s3] sm:$0xff]  ;;  %v124_v7 = vld [vmem:[%s313_s5 + $0x18] sm:$0xff] }
   0xe   :  { %82 = vmatpush.msra.mxu0 %v57_v1  ;;  %144 = vmatpush.msra.mxu2 %v124_v7  ;;  %v167_v8 = vld [vmem:[%s310_s2] ss:$0 sm:$0xff]  ;;  %v123_v12 = vld [vmem:[%s313_s5 + $0x10] sm:$0xff]  ;;  %v122_v13 = vld [vmem:[%s313_s5 + $0x8] sm:$0xff] }
   0xf   :  { %160 = vmatmul.msk.f32.vlgmr.msra.gmra.mxu0 %vm63_vm0, %v56_v2  ;;  %113 = vmatpush.msra.mxu1 %v90_v4  ;;  %v121_v14 = vld [vmem:[%s313_s5] sm:$0xff] }
  0x10   :  { %145 = vmatpush.msra.mxu2 %v123_v12  ;;  %v168_v15 = vld [vmem:[%s312_s4] ss:$0 sm:$0xff] }
  0x11   :  { %114 = vmatpush.msra.mxu1 %v89_v5  ;;  %v169_v19 = vld [vmem:[%s314_s6] ss:$0 sm:$0xff] }
  0x12   :  { %146 = vmatpush.msra.mxu2 %v122_v13 }
  0x13   :  { %115 = vmatpush.msra.mxu1 %v88_v6 }
  0x14   :  { %147 = vmatpush.msra.mxu2 %v121_v14 }
  0x8c   :  { %v84_v9 = vpop.f32.mrf.mxu0 }
  0x8d   :  { %v85_v10 = vadd.f32 %v167_v8, %v84_v9 }
  0x8f   :  { %v87_v11 = vmax.f32 %v85_v10, 0.0 }
  0x91   :  { %161 = vmatmul.msk.f32.vlgmr.msra.gmra.mxu1 %vm96_vm1, %v87_v11 }
 0x10e   :  { %v117_v16 = vpop.f32.mrf.mxu1 }
 0x10f   :  { %v118_v17 = vadd.f32 %v168_v15, %v117_v16 }
 0x111   :  { %v120_v18 = vmax.f32 %v118_v17, 0.0 }
 0x113   :  { %162 = vmatmul.msk.f32.vlgmr.msra.gmra.mxu2 %vm96_vm1, %v120_v18 }
 0x196   :  { %v149_v20 = vpop.f32.mrf.mxu2 }
 0x197   :  { %v150_v21 = vadd.f32 %v169_v19, %v149_v20 }
 0x199   :  { %153 = vst.msk [vmem:[%s315_s7] sm:$0xff] %vm152_vm2, %v150_v21 }
 0x19a   :  { %158 = vsyncpa [#allocation3], 1 }
 0x19b   :  { %159 = vsyncpa [#allocation5], 1 }

</bundles_post_ra>
